<compile_context>
chip_gen: v6e
topology: v6e:2x2x1
jax: 0.10.0
libtpu: 0.0.40
codegen_flags: <defaults>
</compile_context>

<pallas_src>
import functools

import jax
import jax.numpy as jnp
from jax.experimental import pallas as pl
from jax.experimental.pallas import tpu as pltpu


def _pointnet_kernel(x_ref, *refs, num_layers, tbn, s):
    """x_ref: (tbn*s, Cin) bf16.  refs = [w1, b1, w2, b2, ..., out].

    w_k: (cin_k, cout_k) bf16 (cout_k padded to a multiple of 128, BN folded).
    b_k: (1, cout_k) f32.
    out: (tbn, cout_last) f32 -- max over the S (sample) axis of the final
    layer's activations.
    """
    o_ref = refs[-1]
    w_refs = refs[:-1]

    h = x_ref[...]                                   # (tbn*s, Cin) bf16
    acc = None
    for k in range(num_layers):
        w = w_refs[2 * k][...]                       # (cin_k, cout_k) bf16
        b = w_refs[2 * k + 1][...]                   # (1, cout_k)    f32
        # MXU matmul with bf16 inputs, f32 accumulation.
        acc = jnp.dot(h, w, preferred_element_type=jnp.float32)
        acc = jnp.maximum(acc + b, 0.0)              # bias + ReLU in f32 (VPU)
        if k + 1 < num_layers:
            h = acc.astype(jnp.bfloat16)             # bf16 feed for next matmul

    cout = acc.shape[-1]
    # (tbn*s, cout) -> (tbn, s, cout): lane dim (multiple of 128) is unchanged,
    # so this is layout-preserving; then reduce (max) over the sample axis.
    o_ref[...] = jnp.max(acc.reshape(tbn, s, cout), axis=1).astype(o_ref.dtype)


def _pad_to_multiple(n, m):
    return ((n + m - 1) // m) * m


def _choose_tbn(bn_total, s, *, target_rows=4096, min_tbn=8):
    """Pick the per-step point tile: ~target_rows matmul rows, multiple of 8
    (sublane-aligned), and >= 2 grid steps when possible (v7x megacore)."""
    tbn = max(min_tbn, target_rows // max(s, 1))
    if bn_total >= 2 * min_tbn:
        tbn = min(tbn, bn_total // 2)                # keep >= 2 grid steps
    tbn = min(tbn, max(bn_total, min_tbn))
    tbn = max(min_tbn, (tbn // 8) * 8)
    return tbn


def _prepare_params(folded_params):
    """Zero-pad every layer's output channels to a multiple of 128 (lane-dense
    activations / stores) and cast weights to bf16 for the MXU.  Padded output
    channels have zero weight & bias, so they stay exactly 0 through ReLU and
    the matching (zero) input rows of the next layer's weight ignore them."""
    prepared = []
    cin_pad = folded_params[0][0].shape[0]           # input channels NOT padded
    for w, b in folded_params:
        cin, cout = w.shape
        cout_pad = _pad_to_multiple(cout, 128)
        w_p = jnp.zeros((cin_pad, cout_pad), jnp.float32).at[:cin, :cout].set(w)
        b_p = jnp.zeros((1, cout_pad), jnp.float32).at[:, :cout].set(
            jnp.reshape(b, (1, cout)))
        prepared.append((w_p.astype(jnp.bfloat16), b_p))
        cin_pad = cout_pad
    return prepared


def pointnet_forward(x, folded_params, *, tbn=None, target_rows=4096,
                     vmem_limit_bytes=64 * 1024 * 1024):
    """x: (B, N, S, Cin) f32.  folded_params: [(W, b)] per layer with BN folded,
    W: (cin_k, cout_k) f32, b: (1, cout_k) f32.  Returns (B, N, cout_last) f32."""
    assert len(folded_params) >= 1
    B, N, S, Cin = x.shape
    num_layers = len(folded_params)
    cout_last = folded_params[-1][0].shape[1]        # true (unpadded) channels

    params = _prepare_params(folded_params)
    cout_pad = params[-1][0].shape[1]

    bn_total = B * N
    if tbn is None:
        tbn = _choose_tbn(bn_total, S, target_rows=target_rows)
    bn_pad = _pad_to_multiple(bn_total, tbn)
    grid = (bn_pad // tbn,)

    # Pre-flatten to a 2D matmul-ready slab; ship as bf16 (halves x HBM bytes,
    # lossless w.r.t. the bf16 MXU matmul).  Pad rows so the grid tiles evenly;
    # padded rows are sliced off the output below.
    x2d = x.reshape(bn_total * S, Cin).astype(jnp.bfloat16)
    if bn_pad != bn_total:
        x2d = jnp.pad(x2d, ((0, (bn_pad - bn_total) * S), (0, 0)))

    flat_args = []
    in_specs = [pl.BlockSpec((tbn * S, Cin), lambda i: (i, 0))]
    for w, b in params:
        flat_args.append(w)
        flat_args.append(b)
        # Grid-invariant full-array blocks (index_map always (0, 0)).  At
        # PointNet-scale channel counts these could be single-buffered to save
        # VMEM; default pipelining is kept for robustness (footprint is tiny).
        in_specs.append(pl.BlockSpec(w.shape, lambda i: (0, 0)))
        in_specs.append(pl.BlockSpec(b.shape, lambda i: (0, 0)))

    out = pl.pallas_call(
        functools.partial(_pointnet_kernel, num_layers=num_layers, tbn=tbn, s=S),
        out_shape=jax.ShapeDtypeStruct((bn_pad, cout_pad), jnp.float32),
        grid_spec=pltpu.PrefetchScalarGridSpec(
            num_scalar_prefetch=0,
            grid=grid,
            in_specs=in_specs,
            out_specs=pl.BlockSpec((tbn, cout_pad), lambda i: (i, 0)),
        ),
        compiler_params=pltpu.CompilerParams(
            dimension_semantics=("parallel",),
            vmem_limit_bytes=vmem_limit_bytes,
        ),
    )(x2d, *flat_args)

    return out[:bn_total, :cout_last].reshape(B, N, cout_last)


def init_pointnet_params(key, in_channel, layers, eps=1e-5):
    """Deterministically build per-layer (conv W, conv b, BN gamma/beta/mean/var)
    and fold BN (eval mode) into the 1x1 conv, returning [(W_folded, b_folded)]
    with W_folded: (cin, cout), b_folded: (1, cout), both f32."""
    folded = []
    cin = in_channel
    for cout in layers:
        key, kw, kb, kg, kbe, km, kv = jax.random.split(key, 7)
        # Conv2d(cin, cout, 1) weight (cout, cin, 1, 1) -> (cin, cout) for x @ W
        bound = 1.0 / jnp.sqrt(cin)
        w = jax.random.uniform(kw, (cout, cin), jnp.float32, -bound, bound)
        b = jax.random.uniform(kb, (cout,), jnp.float32, -bound, bound)
        # BatchNorm2d params (deterministic, non-trivial)
        gamma = 1.0 + 0.1 * jax.random.normal(kg, (cout,), jnp.float32)
        beta = 0.1 * jax.random.normal(kbe, (cout,), jnp.float32)
        rmean = 0.1 * jax.random.normal(km, (cout,), jnp.float32)
        rvar = 1.0 + 0.1 * jax.random.uniform(kv, (cout,), jnp.float32)
        # Fold BN (eval): y = ((x@W^T + b) - mean)/sqrt(var+eps)*gamma + beta
        scale = gamma / jnp.sqrt(rvar + eps)                  # (cout,)
        w_folded = (w * scale[:, None]).T                     # (cin, cout)
        b_folded = ((b - rmean) * scale + beta)[None, :]      # (1, cout)
        folded.append((w_folded, b_folded))
        cin = cout
    return folded


if __name__ == "__main__":
    # Small shapes: batch=2, npoint N=16, nsample S=8, in_channel=4, layers=[32, 64]
    B, N, S, Cin = 2, 16, 8, 4
    layers = [32, 64]

    key = jax.random.PRNGKey(0)
    key, kx = jax.random.split(key)
    x = jax.random.normal(kx, (B, N, S, Cin), jnp.float32)

    folded = init_pointnet_params(key, Cin, layers)

    out = pointnet_forward(x, folded)
    out = jax.block_until_ready(out)
    assert out.shape == (B, N, layers[-1]), out.shape

    # Pure-JAX reference mirroring the kernel's numerics exactly
    # (bf16 MXU inputs, f32 accumulate / bias / ReLU / max, padded channels).
    params = _prepare_params(folded)
    h = x.reshape(B * N * S, Cin).astype(jnp.bfloat16)
    acc = None
    for k, (w, b) in enumerate(params):
        acc = jnp.maximum(jnp.dot(h, w, preferred_element_type=jnp.float32) + b, 0.0)
        if k + 1 < len(params):
            h = acc.astype(jnp.bfloat16)
    ref = jnp.max(acc.reshape(B * N, S, -1), axis=1)[:, :layers[-1]]
    ref = ref.reshape(B, N, layers[-1])
    assert jnp.allclose(out, ref, atol=5e-3, rtol=5e-3), \
        float(jnp.max(jnp.abs(out - ref)))

    print("KERNEL_OK")
</pallas_src>

<mosaic_0001>
module attributes {stable_mosaic.version = 11 : i64} {
  func.func @_pointnet_kernel(%arg0: i32, %arg1: memref<128x4xbf16, #tpu.memory_space<vmem>>, %arg2: memref<4x128xbf16, #tpu.memory_space<vmem>>, %arg3: memref<1x128xf32, #tpu.memory_space<vmem>>, %arg4: memref<128x128xbf16, #tpu.memory_space<vmem>>, %arg5: memref<1x128xf32, #tpu.memory_space<vmem>>, %arg6: memref<16x128xf32, #tpu.memory_space<vmem>>) attributes {dimension_semantics = [#tpu.dimension_semantics<parallel>], iteration_bounds = array<i64: 2>, scalar_prefetch = 0 : i64, scratch_operands = 0 : i64, tpu.core_type = #tpu.core_type<tc>, window_params = [{transform_indices = @transform_0, window_bounds = array<i64: 128, 4>}, {pipeline_mode = #tpu.pipeline_mode<synchronous>, transform_indices = @transform_1, window_bounds = array<i64: 4, 128>}, {pipeline_mode = #tpu.pipeline_mode<synchronous>, transform_indices = @transform_2, window_bounds = array<i64: 1, 128>}, {pipeline_mode = #tpu.pipeline_mode<synchronous>, transform_indices = @transform_3, window_bounds = array<i64: 128, 128>}, {pipeline_mode = #tpu.pipeline_mode<synchronous>, transform_indices = @transform_4, window_bounds = array<i64: 1, 128>}, {transform_indices = @transform_5, window_bounds = array<i64: 16, 128>}]} {
    %c0 = arith.constant 0 : index
    %c0_0 = arith.constant 0 : index
    %0 = vector.load %arg1[%c0, %c0_0] : memref<128x4xbf16, #tpu.memory_space<vmem>>, vector<128x4xbf16>
    %c0_1 = arith.constant 0 : index
    %c0_2 = arith.constant 0 : index
    %1 = vector.load %arg2[%c0_1, %c0_2] : memref<4x128xbf16, #tpu.memory_space<vmem>>, vector<4x128xbf16>
    %c0_3 = arith.constant 0 : index
    %c0_4 = arith.constant 0 : index
    %2 = vector.load %arg3[%c0_3, %c0_4] : memref<1x128xf32, #tpu.memory_space<vmem>>, vector<1x128xf32>
    %cst = arith.constant dense<0.000000e+00> : vector<128x128xf32>
    %3 = tpu.matmul %0, %1, %cst {dimension_numbers = #tpu.dot_dimension_numbers<[1], [0], [0], [1], [0, 0, 1, 1], [], []>} : vector<128x4xbf16>, vector<4x128xbf16>, vector<128x128xf32> -> vector<128x128xf32>
    %4 = vector.broadcast %2 : vector<1x128xf32> to vector<128x128xf32>
    %5 = arith.addf %3, %4 : vector<128x128xf32>
    %cst_5 = arith.constant 0.000000e+00 : f32
    %6 = vector.broadcast %cst_5 : f32 to vector<128x128xf32>
    %7 = arith.maximumf %5, %6 : vector<128x128xf32>
    %8 = arith.truncf %7 : vector<128x128xf32> to vector<128x128xbf16>
    %c0_6 = arith.constant 0 : index
    %c0_7 = arith.constant 0 : index
    %9 = vector.load %arg4[%c0_6, %c0_7] : memref<128x128xbf16, #tpu.memory_space<vmem>>, vector<128x128xbf16>
    %c0_8 = arith.constant 0 : index
    %c0_9 = arith.constant 0 : index
    %10 = vector.load %arg5[%c0_8, %c0_9] : memref<1x128xf32, #tpu.memory_space<vmem>>, vector<1x128xf32>
    %cst_10 = arith.constant dense<0.000000e+00> : vector<128x128xf32>
    %11 = tpu.matmul %8, %9, %cst_10 {dimension_numbers = #tpu.dot_dimension_numbers<[1], [0], [0], [1], [0, 0, 1, 1], [], []>} : vector<128x128xbf16>, vector<128x128xbf16>, vector<128x128xf32> -> vector<128x128xf32>
    %12 = vector.broadcast %10 : vector<1x128xf32> to vector<128x128xf32>
    %13 = arith.addf %11, %12 : vector<128x128xf32>
    %cst_11 = arith.constant 0.000000e+00 : f32
    %14 = vector.broadcast %cst_11 : f32 to vector<128x128xf32>
    %15 = arith.maximumf %13, %14 : vector<128x128xf32>
    %16 = vector.shape_cast %15 : vector<128x128xf32> to vector<16x8x128xf32>
    %cst_12 = arith.constant dense<0xFF800000> : vector<16x128xf32>
    %17 = vector.multi_reduction <maximumf>, %16, %cst_12 [1] : vector<16x8x128xf32> to vector<16x128xf32>
    %c0_13 = arith.constant 0 : index
    %c0_14 = arith.constant 0 : index
    %18 = vector.load %arg6[%c0_13, %c0_14] : memref<16x128xf32, #tpu.memory_space<vmem>>, vector<16x128xf32>
    tpu.vector_store %arg6[%c0_13, %c0_14], %17 {strides = array<i32>} : memref<16x128xf32, #tpu.memory_space<vmem>>, vector<16x128xf32>,
    return
  }
  func.func @transform_0(%arg0: i32) -> (i32, i32) {
    %c0_i32 = arith.constant 0 : i32
    %c0_i32_0 = arith.constant 0 : i32
    return %arg0, %c0_i32 : i32, i32
  }
  func.func @transform_1(%arg0: i32) -> (i32, i32) {
    %c0_i32 = arith.constant 0 : i32
    %c0_i32_0 = arith.constant 0 : i32
    %c0_i32_1 = arith.constant 0 : i32
    return %c0_i32, %c0_i32_0 : i32, i32
  }
  func.func @transform_2(%arg0: i32) -> (i32, i32) {
    %c0_i32 = arith.constant 0 : i32
    %c0_i32_0 = arith.constant 0 : i32
    %c0_i32_1 = arith.constant 0 : i32
    return %c0_i32, %c0_i32_0 : i32, i32
  }
  func.func @transform_3(%arg0: i32) -> (i32, i32) {
    %c0_i32 = arith.constant 0 : i32
    %c0_i32_0 = arith.constant 0 : i32
    %c0_i32_1 = arith.constant 0 : i32
    return %c0_i32, %c0_i32_0 : i32, i32
  }
  func.func @transform_4(%arg0: i32) -> (i32, i32) {
    %c0_i32 = arith.constant 0 : i32
    %c0_i32_0 = arith.constant 0 : i32
    %c0_i32_1 = arith.constant 0 : i32
    return %c0_i32, %c0_i32_0 : i32, i32
  }
  func.func @transform_5(%arg0: i32) -> (i32, i32) {
    %c0_i32 = arith.constant 0 : i32
    %c0_i32_0 = arith.constant 0 : i32
    return %arg0, %c0_i32 : i32, i32
  }
}

</mosaic_0001>

<bundles_post_ra>
// kernel: tpu_custom_call.1
= control target key start
LH: loop header
LB: loop body
LE: loop exit
PB: predicated region body
PF: predicated region fallthrough
CT: control target
= control target key end

     0   :  { %10 = vsyncpa [#allocation3], 0  ;;  %s1314_s0 = inlined_call_operand.vmem [shape: bf16[256,4], index: 0, kind: input, shape index: {}]   ;;  %s1315_s1 = inlined_call_operand.vmem [shape: bf16[4,128], index: 1, kind: input, shape index: {}]   ;;  %s1316_s2 = inlined_call_operand.vmem [shape: f32[1,128], index: 2, kind: input, shape index: {}]   ;;  %s1317_s3 = inlined_call_operand.vmem [shape: bf16[128,128], index: 3, kind: input, shape index: {}]   ;;  %s1318_s4 = inlined_call_operand.vmem [shape: f32[1,128], index: 4, kind: input, shape index: {}]   ;;  %s1319_s5 = inlined_call_operand.hbm [shape: f32[32,128], index: 5, kind: output, shape index: {}]  }
   0x1   :  { %12 = vsyncpa [#allocation3 + $0x1], 0  ;;  %s1121_s18 = smov 0   ;;  %s1123_s19 = smov 0  }
   0x2   :  { %s1125_s20 = smov 0   ;;  %s1127_s21 = smov 0  }
   0x3 LB: > { %s1142_s22 = sadd.s32 4294967295, %s1086_s21   ;;  %s838_s23 = sadd.s32 4294967294, %s1086_s21   ;;  %s1086_s21 = sphi %s1127_s21, %s1325_s21   ;;  %s1082_s20 = sphi %s1125_s20, %s1324_s20   ;;  %s1078_s19 = sphi %s1123_s19, %s1323_s19   ;;  %s1074_s18 = sphi %s1121_s18, %s1322_s18  }
   0x4   : > { %s1146_s24 = sadd.s32 1, %s1086_s21   ;;  %s135_s25 = sadd.s32 1, %s1082_s20 }
   0x5   : > { %s132_s26 = ssub.s32 %s1086_s21, %s1146_s24  ;;  %p145_p0 = scmp.ne.s32.totalorder %s1082_s20, %s1078_s19 }
   0x6   : > { %p133_p1 = scmp.eq.s32.totalorder %s132_s26, 0  ;;  %p146_p2 = scmp.eq.s32.totalorder %s1142_s22, 1 }
   0x7   : > { %p151_p3 = scmp.ne.s32.totalorder %s1078_s19, %s1074_s18  ;;  %p152_p4 = scmp.eq.s32.totalorder %s838_s23, 1 }
   0x8   : > { %s1157_s27 = scalar_select %p133_p1, %s1082_s20, %s135_s25  }
   0x9   : > { %p1159_p5 = por %p146_p2, %p145_p0  ;;  %p1163_p6 = por %p152_p4, %p151_p3 }
   0xa   : > { %p841_p7 = scmp.ge.s32.totalorder %s1086_s21, 1  ;;  %p191_p8 = scmp.lt.s32.totalorder %s1086_s21, 3 }
   0xc   : > { %p192_p9 = pnand %p841_p7, %p191_p8 }
   0xd   : > { %s843_s7 = sshll.u32 (!%p192_p9), %s1142_s22, 4  ;;  %s216_s16 = sand.u32 (!%p192_p9), 1, %s1078_s19  }
   0xe   : > { %195 = sbr.rel (%p192_p9) target bundleno = 487 (0x1e7), region = 40  ;;  %p220_p10 = scmp.lt.s32.totalorder (!%p192_p9), %s843_s7, 31 }
   0xf   : > { %s876_s25 = sshll.u32 (!%p192_p9), %s1142_s22, 8  ;;  %s1274_s22 = scalar_lea.sflag (!%p192_p9), [#allocation3], %s216_s16 }
  0x10   : > { %s1088_s9 = smov (!%p192_p9), [#allocation2]  }
  0x11   : > { %s1030_s10 = sshll.u32 (!%p192_p9), %s1088_s9, 4  ;;  %s1031_s10 = int_to_ptr.vmem [resolvable:$false] %s1030_s10 }
  0x12   : > { %s1032_s11 = scalar_lea.vmem (!%p192_p9), %s1031_s10, 512 }
  0x13   : > { %v243_v0 = vld [vmem:[%s1315_s1] sm:$0x3]  ;;  %vm316_vm0 = vcmask 1041408   ;;  %v1018_v1 = vld [vmem:[%s1317_s3 + $0x38] sm:$0xff]   ;;  %v1019_v3 = vld [vmem:[%s1317_s3 + $0x30] sm:$0xff]   ;;  %s1327_s7 = smov (!%p220_p10, %s843_s7), 31 }
  0x14   : > { %968 = vmatprep.subr.msk.bf16.mxu0 %vm316_vm0, %v243_v0  ;;  %v318_v2 = vsel %vm316_vm0, %v243_v0, 0  ;;  %952 = vmatprep.subr.bf16.mxu1 %v1018_v1  ;;  %vm291_vm1 = vcmask 31744   ;;  %s844_s12 = sshll.u32 %s1327_s7, 2  ;;  %v1020_v4 = vld [vmem:[%s1317_s3 + $0x28] sm:$0xff]   ;;  %v1021_v8 = vld [vmem:[%s1317_s3 + $0x20] sm:$0xff]   ;;  %v1022_v10 = vld [vmem:[%s1317_s3 + $0x18] sm:$0xff]   ;;  %s1265_s7 = scalar_lea.hbm %s1319_s5, %s876_s25 }
  0x15   : > { %903 = vmatpush3.bf16.msra.mxu0 %v318_v2  ;;  %960 = vmatpush3.bf16.msra.mxu1 %v1018_v1  ;;  %s1185_s17 = scalar_lea.vmem %s1314_s0, %s844_s12  ;;  %v1023_v15 = vld [vmem:[%s1317_s3 + $0x10] sm:$0xff]   ;;  %v1024_v16 = vld [vmem:[%s1317_s3 + $0x8] sm:$0xff]   ;;  %v1025_v17 = vld [vmem:[%s1317_s3] sm:$0xff]   ;;  %vm737_vm2 = vcmask 1041409   ;;  %vm739_vm3 = vcmask 1042434   ;;  %vm741_vm4 = vcmask 1043459  }
  0x16   : > { %920 = vmatprep.subr.bf16.mxu0 %v1018_v1  ;;  %953 = vmatprep.subr.bf16.mxu1 %v1019_v3  ;;  %v1010_v5 = vld [vmem:[%s1185_s17] sm:$0xff]   ;;  %v1011_v6 = vld [vmem:[%s1185_s17 + $0x8] sm:$0xff]   ;;  %v1012_v7 = vld [vmem:[%s1185_s17 + $0x10] sm:$0xff]   ;;  %vm743_vm5 = vcmask 1044484   ;;  %vm745_vm6 = vcmask 1045509   ;;  %vm747_vm7 = vcmask 1046534  }
  0x17   : > { %904 = vmatprep.mubr.msk.bf16.mxu0 %vm291_vm1, %v1010_v5  ;;  %v1013_v9 = vld [vmem:[%s1185_s17 + $0x18] sm:$0xff]   ;;  %v1014_v11 = vld [vmem:[%s1185_s17 + $0x20] sm:$0xff]   ;;  %v1015_v12 = vld [vmem:[%s1185_s17 + $0x28] sm:$0xff]   ;;  %vm749_vm8 = vcmask 1047559  }
  0x18   : > { %905 = vmatmul.mubr.msk.bf16.vlgmr.msra.gmra.mxu0 %vm291_vm1, %v1011_v6  ;;  %v1016_v13 = vld [vmem:[%s1185_s17 + $0x30] sm:$0xff]   ;;  %v1017_v14 = vld [vmem:[%s1185_s17 + $0x38] sm:$0xff]   ;;  %v845_v20 = vld [vmem:[%s1316_s2] ss:$0 sm:$0xff]  ;;  %s842_s17 = sshll.u32 %s216_s16, 4 }
  0x19   : > { %961 = vmatpush3.bf16.msra.mxu1 %v1019_v3  ;;  %908 = vmatprep.mubr.msk.bf16.mxu0 %vm291_vm1, %v1012_v7  ;;  %s1252_s23 = scalar_lea.vmem [#allocation2], %s842_s17 }
  0x1a   : > { %954 = vmatprep.subr.bf16.mxu1 %v1020_v4  ;;  %921 = vmatpush3.bf16.msra.mxu0 %v1018_v1  ;;  %s776_s26 = sshll.u32 %s1252_s23, 4  ;;  %s1267_s26 = int_to_ptr.vmem [resolvable:$true] %s776_s26 }
  0x1b   : > { %922 = vmatprep.subr.bf16.mxu0 %v1019_v3  ;;  %s1026_s8 = scalar_lea.vmem %s1267_s26, 256  ;;  %p1033_p0 = scmp.lt.s32.totalorder %s1267_s26, %s1031_s10 }
  0x1c   : > { %p1027_p11 = scmp.ne.s32.totalorder %s1267_s26, %s1026_s8  ;;  %p1034_p1 = scmp.lt.s32.totalorder %s1032_s11, %s1026_s8 }
  0x1d   : > { %962 = vmatpush3.bf16.msra.mxu1 %v1020_v4 }
  0x1e   : > { %955 = vmatprep.subr.bf16.mxu1 %v1021_v8  ;;  %923 = vmatpush3.bf16.msra.mxu0 %v1019_v3  ;;  %p1028_p12 = pnand %p1027_p11, %p1159_p5  ;;  %p1035_p2 = por %p1034_p1, %p1033_p0 }
  0x1f   : > { %924 = vmatprep.subr.bf16.mxu0 %v1020_v4 }
  0x20   : > { %909 = vmatmul.mubr.msk.bf16.gmra.mxu0 %vm291_vm1, %v1013_v9  ;;  %p1029_p13 = pneg %p1028_p12 }
  0x21   : > { %963 = vmatpush3.bf16.msra.mxu1 %v1021_v8  ;;  %912 = vmatprep.mubr.msk.bf16.mxu0 %vm291_vm1, %v1014_v11  ;;  %v1224_v11 = vld [vmem:[%s1318_s4] ss:$0 sm:$0xff] }
  0x22   : > { %956 = vmatprep.subr.bf16.mxu1 %v1022_v10  ;;  %925 = vmatpush3.bf16.msra.mxu0 %v1020_v4  ;;  %p1036_p3 = pnand %p1035_p2, %p1029_p13 }
  0x23   : > { %926 = vmatprep.subr.bf16.mxu0 %v1021_v8 }
  0x25   : > { %964 = vmatpush3.bf16.msra.mxu1 %v1022_v10 }
  0x26   : > { %927 = vmatpush3.bf16.msra.mxu0 %v1021_v8  ;;  %957 = vmatprep.subr.bf16.mxu1 %v1023_v15 }
  0x27   : > { %928 = vmatprep.subr.bf16.mxu0 %v1022_v10 }
  0x28   : > { %913 = vmatmul.mubr.msk.bf16.gmra.mxu0 %vm291_vm1, %v1015_v12 }
  0x29   : > { %916 = vmatprep.mubr.msk.bf16.mxu0 %vm291_vm1, %v1016_v13  ;;  %965 = vmatpush3.bf16.msra.mxu1 %v1023_v15 }
  0x2a   : > { %929 = vmatpush3.bf16.msra.mxu0 %v1022_v10  ;;  %958 = vmatprep.subr.bf16.mxu1 %v1024_v16 }
  0x2b   : > { %930 = vmatprep.subr.bf16.mxu0 %v1023_v15 }
  0x2d   : > { %966 = vmatpush3.bf16.msra.mxu1 %v1024_v16 }
  0x2e   : > { %931 = vmatpush3.bf16.msra.mxu0 %v1023_v15  ;;  %959 = vmatprep.subr.bf16.mxu1 %v1025_v17 }
  0x2f   : > { %932 = vmatprep.subr.bf16.mxu0 %v1024_v16 }
  0x30   : > { %917 = vmatmul.mubr.msk.bf16.gmra.mxu0 %vm291_vm1, %v1017_v14 }
  0x31   : > { %967 = vmatpush3.bf16.msra.mxu1 %v1025_v17 }
  0x32   : > { %933 = vmatpush3.bf16.msra.mxu0 %v1024_v16 }
  0x33   : > { %934 = vmatprep.subr.bf16.mxu0 %v1025_v17 }
  0x36   : > { %935 = vmatpush3.bf16.msra.mxu0 %v1025_v17 }
  0xd8   : > { %v906_v18 = vpop.f32.mrf.mxu0 }
  0xd9   : > { %v363_v24 = vadd.f32 %v906_v18, %v845_v20 }
  0xda   : > { %v354_v19 = vpop.f32.mrf.mxu0 }
  0xdb   : > { %v355_v22 = vadd.f32 %v845_v20, %v354_v19  ;;  %v419_v31 = vmax.f32 %v363_v24, 0.0 }
  0xdc   : > { %v907_v21 = vpop.f32.mrf.mxu0 }
  0xdd   : > { %v366_v23 = vadd.f32 %v907_v21, %v845_v20  ;;  %v417_v29 = vmax.f32 %v355_v22, 0.0 }
  0xde   : > { %v357_v25 = vpop.f32.mrf.mxu0 }
  0xdf   : > { %v358_v26 = vadd.f32 %v845_v20, %v357_v25  ;;  %v420_v27 = vmax.f32 %v366_v23, 0.0 }
  0xe0   : > { %v910_v28 = vpop.f32.mrf.mxu0 }
  0xe1   : > { %v418_v30 = vmax.f32 %v358_v26, 0.0  ;;  %v434_v34 = vpack.c.bf16 %v420_v27, %v419_v31  ;;  %v379_v38 = vadd.f32 %v910_v28, %v845_v20 }
  0xe2   : > { %v370_v32 = vpop.f32.mrf.mxu0 }
  0xe3   : > { %v433_v33 = vpack.c.bf16 %v418_v30, %v417_v29  ;;  %v371_v36 = vadd.f32 %v845_v20, %v370_v32  ;;  %v423_v45 = vmax.f32 %v379_v38, 0.0 }
  0xe4   : > { %v911_v35 = vpop.f32.mrf.mxu0 }
  0xe5   : > { %v382_v37 = vadd.f32 %v911_v35, %v845_v20  ;;  %936 = vmatprep.mubr.bf16.mxu0 %v433_v33  ;;  %v421_v43 = vmax.f32 %v371_v36, 0.0 }
  0xe6   : > { %v373_v39 = vpop.f32.mrf.mxu0  ;;  %937 = vmatmul.mubr.bf16.vlgmr.msra.gmra.mxu0 %v434_v34 }
  0xe7   : > { %v374_v40 = vadd.f32 %v845_v20, %v373_v39  ;;  %v424_v41 = vmax.f32 %v382_v37, 0.0 }
  0xe8   : > { %v914_v42 = vpop.f32.mrf.mxu0 }
  0xe9   : > { %v422_v44 = vmax.f32 %v374_v40, 0.0  ;;  %v436_v48 = vpack.c.bf16 %v424_v41, %v423_v45  ;;  %v395_v52 = vadd.f32 %v914_v42, %v845_v20 }
  0xea   : > { %v386_v46 = vpop.f32.mrf.mxu0 }
  0xeb   : > { %v435_v47 = vpack.c.bf16 %v422_v44, %v421_v43  ;;  %v387_v50 = vadd.f32 %v845_v20, %v386_v46  ;;  %v427_v59 = vmax.f32 %v395_v52, 0.0 }
  0xec   : > { %v915_v49 = vpop.f32.mrf.mxu0 }
  0xed   : > { %v398_v51 = vadd.f32 %v915_v49, %v845_v20  ;;  %940 = vmatprep.mubr.bf16.mxu1 %v435_v47  ;;  %v425_v57 = vmax.f32 %v387_v50, 0.0 }
  0xee   : > { %v389_v53 = vpop.f32.mrf.mxu0  ;;  %941 = vmatmul.mubr.bf16.vlgmr.msra.gmra.mxu1 %v436_v48 }
  0xef   : > { %v390_v54 = vadd.f32 %v845_v20, %v389_v53  ;;  %v428_v55 = vmax.f32 %v398_v51, 0.0 }
  0xf0   : > { %v918_v56 = vpop.f32.mrf.mxu0 }
  0xf1   : > { %v426_v58 = vmax.f32 %v390_v54, 0.0  ;;  %v438_v62 = vpack.c.bf16 %v428_v55, %v427_v59  ;;  %v411_v2 = vadd.f32 %v918_v56, %v845_v20 }
  0xf2   : > { %v402_v60 = vpop.f32.mrf.mxu0 }
  0xf3   : > { %v437_v61 = vpack.c.bf16 %v426_v58, %v425_v57  ;;  %v403_v0 = vadd.f32 %v845_v20, %v402_v60  ;;  %v431_v8 = vmax.f32 %v411_v2, 0.0 }
  0xf4   : > { %v919_v63 = vpop.f32.mrf.mxu0 }
  0xf5   : > { %v414_v1 = vadd.f32 %v919_v63, %v845_v20  ;;  %944 = vmatprep.mubr.bf16.mxu1 %v437_v61  ;;  %v429_v6 = vmax.f32 %v403_v0, 0.0 }
  0xf6   : > { %v405_v3 = vpop.f32.mrf.mxu0  ;;  %945 = vmatmul.mubr.bf16.gmra.mxu1 %v438_v62 }
  0xf7   : > { %v406_v4 = vadd.f32 %v845_v20, %v405_v3  ;;  %v432_v5 = vmax.f32 %v414_v1, 0.0 }
  0xf9   : > { %v430_v7 = vmax.f32 %v406_v4, 0.0  ;;  %v440_v10 = vpack.c.bf16 %v432_v5, %v431_v8 }
  0xfb   : > { %v439_v9 = vpack.c.bf16 %v430_v7, %v429_v6 }
  0xfd   : > { %948 = vmatprep.mubr.bf16.mxu1 %v439_v9 }
  0xfe   : > { %949 = vmatmul.mubr.bf16.gmra.mxu1 %v440_v10 }
 0x1a6   : > { %v938_v12 = vpop.f32.mrf.mxu0 }
 0x1a7   : > { %v555_v13 = vadd.f32 %v938_v12, %v1224_v11 }
 0x1a8   : > { %v546_v14 = vpop.f32.mrf.mxu0 }
 0x1a9   : > { %v611_v15 = vmax.f32 %v555_v13, 0.0  ;;  %v547_v16 = vadd.f32 %v1224_v11, %v546_v14 }
 0x1aa   : > { %v939_v17 = vpop.f32.mrf.mxu0 }
 0x1ab   : > { %v637_v18 = vrot.slane %v611_v15, 4  ;;  %v609_v19 = vmax.f32 %v547_v16, 0.0  ;;  %v558_v20 = vadd.f32 %v939_v17, %v1224_v11 }
 0x1ac   : > { %v549_v21 = vpop.f32.mrf.mxu0 }
 0x1ad   : > { %v638_v22 = vmax.f32 %v611_v15, %v637_v18  ;;  %v625_v23 = vrot.slane %v609_v19, 4  ;;  %v612_v24 = vmax.f32 %v558_v20, 0.0  ;;  %v550_v25 = vadd.f32 %v1224_v11, %v549_v21 }
 0x1ae   : > { %v942_v26 = vpop.f32.mrf.mxu1 }
 0x1af   : > { %v639_v27 = vrot.slane %v638_v22, 2  ;;  %v626_v28 = vmax.f32 %v609_v19, %v625_v23  ;;  %v643_v29 = vrot.slane %v612_v24, 4  ;;  %v610_v30 = vmax.f32 %v550_v25, 0.0 }
 0x1b0   : > { %v571_v31 = vadd.f32 %v942_v26, %v1224_v11  ;;  %v562_v32 = vpop.f32.mrf.mxu1 }
 0x1b1   : > { %v640_v33 = vmax.f32 %v638_v22, %v639_v27  ;;  %v627_v34 = vrot.slane %v626_v28, 2  ;;  %v644_v35 = vmax.f32 %v612_v24, %v643_v29  ;;  %v631_v36 = vrot.slane %v610_v30, 4 }
 0x1b2   : > { %v615_v37 = vmax.f32 %v571_v31, 0.0  ;;  %v563_v38 = vadd.f32 %v1224_v11, %v562_v32  ;;  %v943_v39 = vpop.f32.mrf.mxu1 }
 0x1b3   : > { %v641_v40 = vrot.slane %v640_v33, 1  ;;  %v628_v41 = vmax.f32 %v626_v28, %v627_v34  ;;  %v645_v42 = vrot.slane %v644_v35, 2  ;;  %v632_v43 = vmax.f32 %v610_v30, %v631_v36 }
 0x1b4   : > { %v661_v44 = vrot.slane %v615_v37, 4  ;;  %v613_v45 = vmax.f32 %v563_v38, 0.0  ;;  %v574_v46 = vadd.f32 %v943_v39, %v1224_v11  ;;  %v565_v47 = vpop.f32.mrf.mxu1 }
 0x1b5   : > { %v629_v48 = vrot.slane %v628_v41, 1  ;;  %v633_v49 = vrot.slane %v632_v43, 2  ;;  %v566_v53 = vadd.f32 %v1224_v11, %v565_v47  ;;  %v642_v55 = vmax.f32 %v640_v33, %v641_v40 }
 0x1b6   : > { %v662_v50 = vmax.f32 %v615_v37, %v661_v44  ;;  %v649_v51 = vrot.slane %v613_v45, 4  ;;  %v616_v52 = vmax.f32 %v574_v46, 0.0  ;;  %v946_v54 = vpop.f32.mrf.mxu1  ;;  %v646_v56 = vmax.f32 %v644_v35, %v645_v42 }
 0x1b7   : > { %v634_v57 = vmax.f32 %v632_v43, %v633_v49  ;;  %v587_v58 = vadd.f32 %v946_v54, %v1224_v11  ;;  %v614_v62 = vmax.f32 %v566_v53, 0.0  ;;  %v630_v0 = vmax.f32 %v628_v41, %v629_v48 }
 0x1b8   : > { %v663_v59 = vrot.slane %v662_v50, 2  ;;  %v650_v60 = vmax.f32 %v613_v45, %v649_v51  ;;  %v667_v61 = vrot.slane %v616_v52, 4  ;;  %v578_v63 = vpop.f32.mrf.mxu1  ;;  %v647_v14 = vrot.slane %v646_v56, 1 }
 0x1b9   : > { %v635_v1 = vrot.slane %v634_v57, 1  ;;  %v619_v2 = vmax.f32 %v587_v58, 0.0  ;;  %v579_v3 = vadd.f32 %v1224_v11, %v578_v63  ;;  %v655_v7 = vrot.slane %v614_v62, 4 }
 0x1ba   : > { %v664_v4 = vmax.f32 %v662_v50, %v663_v59  ;;  %v651_v5 = vrot.slane %v650_v60, 2  ;;  %v668_v6 = vmax.f32 %v616_v52, %v667_v61  ;;  %v947_v8 = vpop.f32.mrf.mxu1  ;;  %v648_v30 = vmax.f32 %v646_v56, %v647_v14 }
 0x1bb   : > { %v636_v9 = vmax.f32 %v634_v57, %v635_v1  ;;  %v685_v10 = vrot.slane %v619_v2, 4  ;;  %v617_v12 = vmax.f32 %v579_v3, 0.0  ;;  %v590_v13 = vadd.f32 %v947_v8, %v1224_v11 }
 0x1bc   : > { %v652_v15 = vmax.f32 %v650_v60, %v651_v5  ;;  %v669_v16 = vrot.slane %v668_v6, 2  ;;  %v656_v17 = vmax.f32 %v614_v62, %v655_v7  ;;  %v581_v18 = vpop.f32.mrf.mxu1  ;;  %v665_v23 = vrot.slane %v664_v4, 1 }
 0x1bd   : > { %v738_v19 = vsel %vm737_vm2, %v636_v9, %v630_v0  ;;  %v686_v20 = vmax.f32 %v619_v2, %v685_v10  ;;  %v673_v21 = vrot.slane %v617_v12, 4  ;;  %v620_v22 = vmax.f32 %v590_v13, 0.0 }
 0x1be   : > { %v653_v24 = vrot.slane %v652_v15, 1  ;;  %v950_v25 = vpop.f32.mrf.mxu1  ;;  %v740_v26 = vsel %vm739_vm3, %v642_v55, %v738_v19  ;;  %v670_v27 = vmax.f32 %v668_v6, %v669_v16  ;;  %v657_v28 = vrot.slane %v656_v17, 2 }
 0x1bf   : > { %v674_v29 = vmax.f32 %v617_v12, %v673_v21  ;;  %v687_v31 = vrot.slane %v686_v20, 2  ;;  %v691_v32 = vrot.slane %v620_v22, 4  ;;  %v582_v33 = vadd.f32 %v1224_v11, %v581_v18 }
 0x1c0   : > { %v594_v34 = vpop.f32.mrf.mxu1  ;;  %v654_v35 = vmax.f32 %v652_v15, %v653_v24  ;;  %v658_v36 = vmax.f32 %v656_v17, %v657_v28  ;;  %v603_v37 = vadd.f32 %v950_v25, %v1224_v11  ;;  %v742_v38 = vsel %vm741_vm4, %v648_v30, %v740_v26 }
 0x1c1   : > { %v675_v39 = vrot.slane %v674_v29, 2  ;;  %v692_v40 = vmax.f32 %v620_v22, %v691_v32  ;;  %v618_v41 = vmax.f32 %v582_v33, 0.0  ;;  %v666_v43 = vmax.f32 %v664_v4, %v665_v23 }
 0x1c2   : > { %v951_v42 = vpop.f32.mrf.mxu1  ;;  %v671_v44 = vrot.slane %v670_v27, 1  ;;  %v659_v45 = vrot.slane %v658_v36, 1  ;;  %v623_v46 = vmax.f32 %v603_v37, 0.0  ;;  %v688_v47 = vmax.f32 %v686_v20, %v687_v31 }
 0x1c3   : > { %v679_v48 = vrot.slane %v618_v41, 4  ;;  %v595_v49 = vadd.f32 %v1224_v11, %v594_v34  ;;  %v606_v50 = vadd.f32 %v951_v42, %v1224_v11  ;;  %v744_v52 = vsel %vm743_vm5, %v654_v35, %v742_v38 }
 0x1c4   : > { %v597_v51 = vpop.f32.mrf.mxu1  ;;  %v660_v53 = vmax.f32 %v658_v36, %v659_v45  ;;  %v693_v54 = vrot.slane %v692_v40, 2  ;;  %v709_v55 = vrot.slane %v623_v46, 4  ;;  %v676_v56 = vmax.f32 %v674_v29, %v675_v39 }
 0x1c5   : > { %v680_v57 = vmax.f32 %v618_v41, %v679_v48  ;;  %v621_v58 = vmax.f32 %v595_v49, 0.0  ;;  %v624_v59 = vmax.f32 %v606_v50, 0.0  ;;  %v672_v60 = vmax.f32 %v670_v27, %v671_v44 }
 0x1c6   : > { %v746_v61 = vsel %vm745_vm6, %v660_v53, %v744_v52  ;;  %v710_v62 = vmax.f32 %v623_v46, %v709_v55  ;;  %v598_v63 = vadd.f32 %v1224_v11, %v597_v51  ;;  %v694_v3 = vmax.f32 %v692_v40, %v693_v54 }
 0x1c7   : > { %v748_v0 = vsel %vm747_vm7, %v666_v43, %v746_v61  ;;  %v681_v1 = vrot.slane %v680_v57, 2  ;;  %v697_v2 = vrot.slane %v621_v58, 4  ;;  %v715_v4 = vrot.slane %v624_v59, 4 }
 0x1c8   : > { %v622_v5 = vmax.f32 %v598_v63, 0.0  ;;  %v750_v6 = vsel %vm749_vm8, %v672_v60, %v748_v0  ;;  %v677_v7 = vrot.slane %v676_v56, 1  ;;  %v711_v9 = vrot.slane %v710_v62, 2 }
 0x1c9   : > { %v682_v8 = vmax.f32 %v680_v57, %v681_v1  ;;  %v698_v10 = vmax.f32 %v621_v58, %v697_v2  ;;  %760 = vst [vmem:[%s1252_s23] sm:$0xff] %v750_v6  ;;  %v689_v12 = vrot.slane %v688_v47, 1  ;;  %v716_v13 = vmax.f32 %v624_v59, %v715_v4 }
 0x1ca   : > { %v703_v11 = vrot.slane %v622_v5, 4  ;;  %v695_v16 = vrot.slane %v694_v3, 1  ;;  %v678_v19 = vmax.f32 %v676_v56, %v677_v7  ;;  %v712_v21 = vmax.f32 %v710_v62, %v711_v9 }
 0x1cb   : > { %v683_v14 = vrot.slane %v682_v8, 1  ;;  %v699_v15 = vrot.slane %v698_v10, 2  ;;  %v717_v17 = vrot.slane %v716_v13, 2  ;;  %v690_v23 = vmax.f32 %v688_v47, %v689_v12 }
 0x1cc   : > { %v704_v18 = vmax.f32 %v622_v5, %v703_v11  ;;  %v696_v28 = vmax.f32 %v694_v3, %v695_v16  ;;  %v713_v31 = vrot.slane %v712_v21, 1 }
 0x1cd   : > { %v684_v20 = vmax.f32 %v682_v8, %v683_v14  ;;  %v700_v22 = vmax.f32 %v698_v10, %v699_v15  ;;  %v718_v24 = vmax.f32 %v716_v13, %v717_v17 }
 0x1ce   : > { %v705_v25 = vrot.slane %v704_v18, 2  ;;  %v714_v37 = vmax.f32 %v712_v21, %v713_v31 }
 0x1cf   : > { %v751_v26 = vsel %vm737_vm2, %v684_v20, %v678_v19  ;;  %v701_v27 = vrot.slane %v700_v22, 1  ;;  %v719_v34 = vrot.slane %v718_v24, 1 }
 0x1d0   : > { %v752_v29 = vsel %vm739_vm3, %v690_v23, %v751_v26  ;;  %v706_v30 = vmax.f32 %v704_v18, %v705_v25 }
 0x1d1   : > { %v702_v32 = vmax.f32 %v700_v22, %v701_v27  ;;  %v753_v33 = vsel %vm741_vm4, %v696_v28, %v752_v29  ;;  %v720_v39 = vmax.f32 %v718_v24, %v719_v34 }
 0x1d2   : > { %v707_v35 = vrot.slane %v706_v30, 1 }
 0x1d3   : > { %v754_v38 = vsel %vm743_vm5, %v702_v32, %v753_v33 }
 0x1d4   : > { %v708_v36 = vmax.f32 %v706_v30, %v707_v35 }
 0x1d6   : > { %v755_v40 = vsel %vm745_vm6, %v708_v36, %v754_v38 }
 0x1d7   : > { %v756_v41 = vsel %vm747_vm7, %v714_v37, %v755_v40 }
 0x1d8   : > { %v757_v42 = vsel %vm749_vm8, %v720_v39, %v756_v41 }
 0x1d9   : > { %761 = vst [vmem:[%s1252_s23 + $0x8] sm:$0xff] %v757_v42 }
 0x1da   : > { %1039 = shalt.err (!%p1036_p3)
}
 0x1db   : > { %s1040_s12 = scalar_lea.hbm %s1265_s7, 256  ;;  %s1044_s15 = scalar_lea.hbm %s1319_s5, 512 }
 0x1dc   : > { %p1041_p4 = scmp.ne.s32.totalorder %s1265_s7, %s1040_s12  ;;  %p1045_p9 = scmp.lt.s32.totalorder %s1265_s7, %s1319_s5 }
 0x1dd   : > { %p1046_p10 = scmp.lt.s32.totalorder %s1044_s15, %s1040_s12 }
 0x1de   : > { %p1042_p7 = pnand %p1041_p4, %p1159_p5 }
 0x1df   : > { %p1047_p11 = por %p1046_p10, %p1045_p9 }
 0x1e0   : > { %p1043_p8 = pneg %p1042_p7 }
 0x1e2   : > { %p1048_p12 = pnand %p1047_p11, %p1043_p8 }
 0x1e4   : > { %1051 = shalt.err (!%p1048_p12)
}
 0x1e5   : > { %s1089_s23 = smov 128   ;;  %s1090_s25 = smov 8  }
 0x1e6   : > { %969 = dma.vmem_to_hbm [thread:$0]  (%p1159_p5), %s1267_s26, 256, %s1265_s7, %s1274_s22, %s1089_s23, %s1089_s23, %s1090_s25  }
 0x1e7 PF: > { %p975_p13 = scmp.ge.s32.totalorder %s1086_s21, 2  ;;  %s791_s30 = sand.u32 1, %s1074_s18  }
 0x1e8   : > { %s792_s6 = scalar_lea.sflag [#allocation3], %s791_s30 }
 0x1e9   : > { %p972_p0 = pnand %p975_p13, %p1163_p6 }
 0x1eb   : > { %p973_p1 = pneg %p972_p0 }
 0x1ed   : > { %1069 = dma.done.wait (%p973_p1), %s792_s6, 256  }
 0x1ee   : > { %1071 = vsyncadd (%p973_p1), %s792_s6, 4294967040  ;;  %p15_p2 = scmp.ge.s32.totalorder %s1146_s24, 4   ;;  %s1322_s18 = smov %s1078_s19 }
 0x1ef   : > { %s1323_s19 = smov %s1082_s20  ;;  %s1324_s20 = smov %s1157_s27 }
 0x1f0   : > { %s1325_s21 = smov %s1146_s24  ;;  %17 = sbr.rel (!%p15_p2) target bundleno = 3 (0x3), region = 75 }
 0x1f5   :  { %797 = vsyncpa [#allocation3], 1 }
 0x1f6   :  { %799 = vsyncpa [#allocation3 + $0x1], 1 }

</bundles_post_ra>
